<compile_context>
chip_gen: v6e
topology: v6e:2x2x1
jax: 0.10.0
libtpu: 0.0.40
codegen_flags: <defaults>
</compile_context>

<pallas_src>
import math

import jax
import jax.numpy as jnp
from jax.experimental import pallas as pl
from jax.experimental.pallas import tpu as pltpu
from typing import NamedTuple


def _round_up(x, m):
    return ((x + m - 1) // m) * m


def _vmem_capacity_bytes():
    """Physical VMEM per TensorCore; conservative 64 MiB (v7x) fallback."""
    try:
        cap = getattr(pltpu.get_tpu_info(), "vmem_capacity_bytes", None)
        if cap:
            return int(cap)
    except Exception:
        pass
    return 64 * 1024 * 1024


# ---------------------------------------------------------------------------
# Kernels
# ---------------------------------------------------------------------------
def _ffn_kernel_fused_out(x_ref, w1_ref, b1_ref, w2_ref, b2_ref, o_ref):
    """f32 output: accumulate the d_ff-tile partial products directly into the
    VMEM-resident output tile (its block index is constant over kf), saving the
    tm*d_model*4B scratch and the finalize copy pass."""
    kf = pl.program_id(1)

    @pl.when(kf == 0)
    def _init():
        o_ref[...] = jnp.zeros_like(o_ref)

    # First matmul (MXU), f32 accumulation; bias + ReLU on the VPU in f32.
    h = jnp.dot(x_ref[...], w1_ref[...], preferred_element_type=jnp.float32)
    h = jnp.maximum(h + b1_ref[pl.ds(kf, 1), :], 0.0)
    # TODO(synk): dropout is identity at inference (PyTorch eval semantics);
    # training-mode dropout would use pltpu.prng_seed / prng_random_bits here.

    # Second matmul: cast activations to the weight dtype (bf16 path) and
    # accumulate this d_ff-tile's partial product into the resident output.
    o_ref[...] += jnp.dot(h.astype(w2_ref.dtype), w2_ref[...],
                          preferred_element_type=jnp.float32)

    @pl.when(kf == pl.num_programs(1) - 1)
    def _finalize():
        o_ref[...] += b2_ref[...]


def _ffn_kernel_scratch_acc(x_ref, w1_ref, b1_ref, w2_ref, b2_ref, o_ref, acc_ref):
    """Non-f32 output: keep an f32 VMEM accumulator, cast once at the end."""
    kf = pl.program_id(1)

    @pl.when(kf == 0)
    def _init():
        acc_ref[...] = jnp.zeros_like(acc_ref)

    h = jnp.dot(x_ref[...], w1_ref[...], preferred_element_type=jnp.float32)
    h = jnp.maximum(h + b1_ref[pl.ds(kf, 1), :], 0.0)
    acc_ref[...] += jnp.dot(h.astype(w2_ref.dtype), w2_ref[...],
                            preferred_element_type=jnp.float32)

    @pl.when(kf == pl.num_programs(1) - 1)
    def _finalize():
        o_ref[...] = (acc_ref[...] + b2_ref[...]).astype(o_ref.dtype)


# ---------------------------------------------------------------------------
# Parameter preparation (do once, reuse across forward calls)
# ---------------------------------------------------------------------------
class FFNParams(NamedTuple):
    w1: jax.Array   # (d_model_p, d_ff_p) compute dtype
    b1: jax.Array   # (n_kf, tf) f32
    w2: jax.Array   # (d_ff_p, d_model_p) compute dtype
    b2: jax.Array   # (1, d_model_p) f32
    d_model: int
    d_ff: int
    tf: int


def prepare_params(w1, b1, w2, b2, *, tf=None, compute_dtype=None):
    """Pad + cast the weights ONCE (hoisted out of the per-call path).

    compute_dtype=None -> bf16 MXU operands by default when weights are f32
    (f32 accumulation in-kernel); pass jnp.float32 for the exact escape hatch.
    TODO(synk): optional fp8(e4m3) weight path for v7x, gated on accuracy.
    """
    d_model, d_ff = w1.shape
    assert w2.shape == (d_ff, d_model) and b1.shape == (d_ff,) and b2.shape == (d_model,)

    wdt = jnp.dtype(w1.dtype)
    if compute_dtype is None:
        cdt = jnp.dtype(jnp.bfloat16) if wdt == jnp.float32 else wdt
    else:
        cdt = jnp.dtype(compute_dtype)

    cap = _vmem_capacity_bytes()
    if tf is None:
        # Bigger d_ff tiles halve the accumulator read-modify-write passes and
        # the per-step pipeline overhead; only affordable with bf16 operands
        # and 128 MiB VMEM (v5e/v6e). 512 on 64 MiB v7x-class parts.
        tf = 1024 if (cap >= 100 * 1024 * 1024 and cdt.itemsize <= 2) else 512

    # Lane-dense / MXU-friendly feature dims; tf a multiple of 128 (>=256 in
    # the defaults), d_model rounded to 256 for the 256x256 MXUs when large.
    d_model_p = _round_up(d_model, 128 if d_model <= 128 else 256)
    tf = max(128, min(_round_up(tf, 128), _round_up(d_ff, 128)))
    d_ff_p = _round_up(d_ff, tf)
    n_kf = d_ff_p // tf

    # Zero padding keeps the math exact: padded d_ff columns give relu(0)=0,
    # padded W2 rows/cols are zero, padded rows/cols are sliced off afterwards.
    w1_p = jnp.pad(w1, ((0, d_model_p - d_model), (0, d_ff_p - d_ff))).astype(cdt)
    w2_p = jnp.pad(w2, ((0, d_ff_p - d_ff), (0, d_model_p - d_model))).astype(cdt)
    b1_p = jnp.pad(b1.astype(jnp.float32), (0, d_ff_p - d_ff)).reshape(n_kf, tf)
    b2_p = jnp.pad(b2.astype(jnp.float32), (0, d_model_p - d_model)).reshape(1, d_model_p)
    return FFNParams(w1_p, b1_p, w2_p, b2_p, d_model, d_ff, tf)


# ---------------------------------------------------------------------------
# Forward
# ---------------------------------------------------------------------------
def feed_forward_prepared(x, params: FFNParams, *, tm=None):
    """x: (..., d_model) with pre-prepared params. Output keeps x.dtype."""
    w1_p, b1_p, w2_p, b2_p, d_model, d_ff, tf = params
    d_model_p, d_ff_p = w1_p.shape
    n_kf = d_ff_p // tf
    cdt = jnp.dtype(w1_p.dtype)
    out_dtype = jnp.dtype(x.dtype)
    use_scratch = out_dtype != jnp.float32

    orig_shape = x.shape
    assert orig_shape[-1] == d_model
    M = math.prod(orig_shape[:-1]) if len(orig_shape) > 1 else 1

    cap = _vmem_capacity_bytes()
    budget = cap - 8 * 1024 * 1024           # headroom for Mosaic internal scratch
    isz, osz = cdt.itemsize, out_dtype.itemsize

    def footprint(tm_):
        f = 2 * tm_ * d_model_p * isz        # x tile (double-buffered)
        f += 2 * d_model_p * tf * isz        # W1 d_ff tile
        f += 2 * tf * d_model_p * isz        # W2 d_ff tile
        f += 2 * d_ff_p * 4 + 2 * d_model_p * 4   # resident biases (tiny)
        f += 2 * tm_ * d_model_p * osz       # output tile
        if use_scratch:
            f += tm_ * d_model_p * 4         # f32 accumulator scratch
        return f

    if tm is None:
        # Row tile large enough that per-row-tile weight re-streaming sits
        # behind the MXU (arithmetic intensity vs weights ~ tm FLOP/byte).
        if cap >= 100 * 1024 * 1024:         # v5e/v6e class (128 MiB VMEM)
            tm = 768 if isz <= 2 else 384
        else:                                # v7x class (64 MiB VMEM / TC)
            tm = 512 if isz <= 2 else 256
    tm = max(8, min(_round_up(tm, 8), _round_up(M, 8)))
    while tm > 8 and footprint(tm) > budget:  # shrink rows (never tf) to fit VMEM
        tm = max(8, _round_up(tm // 2, 8))
    # Give the "parallel" rows axis >=2 tiles so v7x's two TensorCores both run
    # (single-TC chips only pay one extra weight re-stream at small M).
    if _round_up(M, tm) // tm < 2 and tm > 8:
        tm = max(8, _round_up(-(-M // 2), 8))
    M_p = _round_up(M, tm)
    n_row_tiles = M_p // tm

    x2d = x.reshape(M, d_model)
    if (M_p, d_model_p) != (M, d_model):
        x2d = jnp.pad(x2d, ((0, M_p - M), (0, d_model_p - d_model)))
    if x2d.dtype != cdt:
        x2d = x2d.astype(cdt)

    vmem_limit = int(min(cap - 2 * 1024 * 1024,
                         max(footprint(tm) * 5 // 4, 32 * 1024 * 1024)))

    cost = pl.CostEstimate(
        flops=4 * M_p * d_model_p * d_ff_p,                 # two matmuls
        transcendentals=0,
        bytes_accessed=int(M_p * d_model_p * (isz + osz)    # x in + out
                           + n_row_tiles * (w1_p.nbytes + w2_p.nbytes)  # re-stream
                           + b1_p.nbytes + b2_p.nbytes),
    )

    kernel = _ffn_kernel_scratch_acc if use_scratch else _ffn_kernel_fused_out
    scratch = [pltpu.VMEM((tm, d_model_p), jnp.float32)] if use_scratch else []

    out2d = pl.pallas_call(
        kernel,
        out_shape=jax.ShapeDtypeStruct((M_p, d_model_p), out_dtype),
        grid_spec=pltpu.PrefetchScalarGridSpec(
            num_scalar_prefetch=0,
            grid=(n_row_tiles, n_kf),            # rows parallel, d_ff reduction last
            in_specs=[
                pl.BlockSpec((tm, d_model_p), lambda i, kf: (i, 0)),   # x rows (resident over kf)
                pl.BlockSpec((d_model_p, tf), lambda i, kf: (0, kf)),  # W1 d_ff tile
                pl.BlockSpec((n_kf, tf),      lambda i, kf: (0, 0)),   # full b1, resident
                pl.BlockSpec((tf, d_model_p), lambda i, kf: (kf, 0)),  # W2 d_ff tile
                pl.BlockSpec((1, d_model_p),  lambda i, kf: (0, 0)),   # b2, resident
            ],
            out_specs=pl.BlockSpec((tm, d_model_p), lambda i, kf: (i, 0)),
            scratch_shapes=scratch,
        ),
        compiler_params=pltpu.CompilerParams(
            dimension_semantics=("parallel", "arbitrary"),
            vmem_limit_bytes=vmem_limit,
        ),
        cost_estimate=cost,
    )(x2d, w1_p, b1_p, w2_p, b2_p)

    out2d = out2d[:M, :d_model]
    return out2d.reshape(*orig_shape[:-1], d_model)


def feed_forward(x, w1, b1, w2, b2, *, tm=None, tf=None, compute_dtype=None):
    """One-shot convenience. For repeated calls, do prepare_params() once and
    call feed_forward_prepared() per step (avoids re-padding/casting weights)."""
    params = prepare_params(w1, b1, w2, b2, tf=tf, compute_dtype=compute_dtype)
    return feed_forward_prepared(x, params, tm=tm)


def init_params(key, d_model, d_ff):
    """Deterministic init mirroring nn.Linear shapes (weights stored transposed)."""
    k1, k2, k3, k4 = jax.random.split(key, 4)
    bound1 = 1.0 / (d_model ** 0.5)
    bound2 = 1.0 / (d_ff ** 0.5)
    w1 = jax.random.uniform(k1, (d_model, d_ff), jnp.float32, -bound1, bound1)
    b1 = jax.random.uniform(k2, (d_ff,), jnp.float32, -bound1, bound1)
    w2 = jax.random.uniform(k3, (d_ff, d_model), jnp.float32, -bound2, bound2)
    b2 = jax.random.uniform(k4, (d_model,), jnp.float32, -bound2, bound2)
    return w1, b1, w2, b2


if __name__ == "__main__":
    B, S, d_model, d_ff = 2, 8, 32, 64

    key = jax.random.PRNGKey(0)
    kx, kp = jax.random.split(key)
    x = jax.random.normal(kx, (B, S, d_model), dtype=jnp.float32)
    w1, b1, w2, b2 = init_params(kp, d_model, d_ff)

    ref = jnp.maximum(x @ w1 + b1, 0.0) @ w2 + b2

    # Exact-f32 escape hatch (tight tolerance), via the one-shot wrapper.
    out32 = jax.block_until_ready(feed_forward(x, w1, b1, w2, b2,
                                               compute_dtype=jnp.float32))
    assert out32.shape == (B, S, d_model)
    assert jnp.allclose(out32, ref, atol=1e-5, rtol=1e-5)

    # Default path: bf16 MXU operands with f32 accumulation; weights padded /
    # cast once and reused across calls (review item #1).
    params = prepare_params(w1, b1, w2, b2)
    out_a = jax.block_until_ready(feed_forward_prepared(x, params))
    out_b = jax.block_until_ready(feed_forward_prepared(x, params))  # no re-prep
    assert jnp.allclose(out_a, ref, atol=5e-2, rtol=5e-2)
    assert jnp.allclose(out_a, out_b)

    print("KERNEL_OK")
</pallas_src>

<mosaic_0001>
module attributes {stable_mosaic.version = 11 : i64} {
  func.func @_ffn_kernel_fused_out(%arg0: i32, %arg1: i32, %arg2: memref<8x128xf32, #tpu.memory_space<vmem>>, %arg3: memref<128x128xf32, #tpu.memory_space<vmem>>, %arg4: memref<1x128xf32, #tpu.memory_space<vmem>>, %arg5: memref<128x128xf32, #tpu.memory_space<vmem>>, %arg6: memref<1x128xf32, #tpu.memory_space<vmem>>, %arg7: memref<8x128xf32, #tpu.memory_space<vmem>>) attributes {dimension_semantics = [#tpu.dimension_semantics<parallel>, #tpu.dimension_semantics<arbitrary>], iteration_bounds = array<i64: 2, 1>, scalar_prefetch = 0 : i64, scratch_operands = 0 : i64, tpu.core_type = #tpu.core_type<tc>, window_params = [{transform_indices = @transform_0, window_bounds = array<i64: 8, 128>}, {transform_indices = @transform_1, window_bounds = array<i64: 128, 128>}, {pipeline_mode = #tpu.pipeline_mode<synchronous>, transform_indices = @transform_2, window_bounds = array<i64: 1, 128>}, {transform_indices = @transform_3, window_bounds = array<i64: 128, 128>}, {pipeline_mode = #tpu.pipeline_mode<synchronous>, transform_indices = @transform_4, window_bounds = array<i64: 1, 128>}, {transform_indices = @transform_5, window_bounds = array<i64: 8, 128>}]} {
    %c0_i32 = arith.constant 0 : i32
    %0 = arith.cmpi eq, %arg1, %c0_i32 : i32
    %1 = arith.extui %0 : i1 to i32
    %c0_i32_0 = arith.constant 0 : i32
    %2 = arith.cmpi ne, %1, %c0_i32_0 : i32
    scf.if %2 {
      %cst_15 = arith.constant 0.000000e+00 : f32
      %20 = vector.broadcast %cst_15 : f32 to vector<8x128xf32>
      %c0_16 = arith.constant 0 : index
      %c0_17 = arith.constant 0 : index
      %21 = vector.load %arg7[%c0_16, %c0_17] : memref<8x128xf32, #tpu.memory_space<vmem>>, vector<8x128xf32>
      tpu.vector_store %arg7[%c0_16, %c0_17], %20 {strides = array<i32>} : memref<8x128xf32, #tpu.memory_space<vmem>>, vector<8x128xf32>,
    } else {
    }
    %c0 = arith.constant 0 : index
    %c0_1 = arith.constant 0 : index
    %3 = vector.load %arg2[%c0, %c0_1] : memref<8x128xf32, #tpu.memory_space<vmem>>, vector<8x128xf32>
    %c0_2 = arith.constant 0 : index
    %c0_3 = arith.constant 0 : index
    %4 = vector.load %arg3[%c0_2, %c0_3] : memref<128x128xf32, #tpu.memory_space<vmem>>, vector<128x128xf32>
    %cst = arith.constant dense<0.000000e+00> : vector<8x128xf32>
    %5 = tpu.matmul %3, %4, %cst {dimension_numbers = #tpu.dot_dimension_numbers<[1], [0], [0], [1], [0, 0, 1, 1], [], []>} : vector<8x128xf32>, vector<128x128xf32>, vector<8x128xf32> -> vector<8x128xf32>
    %6 = arith.index_cast %arg1 : i32 to index
    %c0_4 = arith.constant 0 : index
    %7 = vector.load %arg4[%6, %c0_4] : memref<1x128xf32, #tpu.memory_space<vmem>>, vector<1x128xf32>
    %8 = vector.broadcast %7 : vector<1x128xf32> to vector<8x128xf32>
    %9 = arith.addf %5, %8 : vector<8x128xf32>
    %cst_5 = arith.constant 0.000000e+00 : f32
    %10 = vector.broadcast %cst_5 : f32 to vector<8x128xf32>
    %11 = arith.maximumf %9, %10 : vector<8x128xf32>
    %c0_6 = arith.constant 0 : index
    %c0_7 = arith.constant 0 : index
    %12 = vector.load %arg7[%c0_6, %c0_7] : memref<8x128xf32, #tpu.memory_space<vmem>>, vector<8x128xf32>
    %c0_8 = arith.constant 0 : index
    %c0_9 = arith.constant 0 : index
    %13 = vector.load %arg5[%c0_8, %c0_9] : memref<128x128xf32, #tpu.memory_space<vmem>>, vector<128x128xf32>
    %cst_10 = arith.constant dense<0.000000e+00> : vector<8x128xf32>
    %14 = tpu.matmul %11, %13, %cst_10 {dimension_numbers = #tpu.dot_dimension_numbers<[1], [0], [0], [1], [0, 0, 1, 1], [], []>} : vector<8x128xf32>, vector<128x128xf32>, vector<8x128xf32> -> vector<8x128xf32>
    %15 = arith.addf %12, %14 : vector<8x128xf32>
    %c0_11 = arith.constant 0 : index
    %c0_12 = arith.constant 0 : index
    %16 = vector.load %arg7[%c0_11, %c0_12] : memref<8x128xf32, #tpu.memory_space<vmem>>, vector<8x128xf32>
    tpu.vector_store %arg7[%c0_11, %c0_12], %15 {strides = array<i32>} : memref<8x128xf32, #tpu.memory_space<vmem>>, vector<8x128xf32>,
    %c0_i32_13 = arith.constant 0 : i32
    %17 = arith.cmpi eq, %arg1, %c0_i32_13 : i32
    %18 = arith.extui %17 : i1 to i32
    %c0_i32_14 = arith.constant 0 : i32
    %19 = arith.cmpi ne, %18, %c0_i32_14 : i32
    scf.if %19 {
      %c0_15 = arith.constant 0 : index
      %c0_16 = arith.constant 0 : index
      %20 = vector.load %arg7[%c0_15, %c0_16] : memref<8x128xf32, #tpu.memory_space<vmem>>, vector<8x128xf32>
      %c0_17 = arith.constant 0 : index
      %c0_18 = arith.constant 0 : index
      %21 = vector.load %arg6[%c0_17, %c0_18] : memref<1x128xf32, #tpu.memory_space<vmem>>, vector<1x128xf32>
      %22 = vector.broadcast %21 : vector<1x128xf32> to vector<8x128xf32>
      %23 = arith.addf %20, %22 : vector<8x128xf32>
      %c0_19 = arith.constant 0 : index
      %c0_20 = arith.constant 0 : index
      %24 = vector.load %arg7[%c0_19, %c0_20] : memref<8x128xf32, #tpu.memory_space<vmem>>, vector<8x128xf32>
      tpu.vector_store %arg7[%c0_19, %c0_20], %23 {strides = array<i32>} : memref<8x128xf32, #tpu.memory_space<vmem>>, vector<8x128xf32>,
    } else {
    }
    return
  }
  func.func @transform_0(%arg0: i32, %arg1: i32) -> (i32, i32) {
    %c0_i32 = arith.constant 0 : i32
    %c0_i32_0 = arith.constant 0 : i32
    return %arg0, %c0_i32 : i32, i32
  }
  func.func @transform_1(%arg0: i32, %arg1: i32) -> (i32, i32) {
    %c0_i32 = arith.constant 0 : i32
    %c0_i32_0 = arith.constant 0 : i32
    return %c0_i32, %arg1 : i32, i32
  }
  func.func @transform_2(%arg0: i32, %arg1: i32) -> (i32, i32) {
    %c0_i32 = arith.constant 0 : i32
    %c0_i32_0 = arith.constant 0 : i32
    %c0_i32_1 = arith.constant 0 : i32
    return %c0_i32, %c0_i32_0 : i32, i32
  }
  func.func @transform_3(%arg0: i32, %arg1: i32) -> (i32, i32) {
    %c0_i32 = arith.constant 0 : i32
    %c0_i32_0 = arith.constant 0 : i32
    return %arg1, %c0_i32 : i32, i32
  }
  func.func @transform_4(%arg0: i32, %arg1: i32) -> (i32, i32) {
    %c0_i32 = arith.constant 0 : i32
    %c0_i32_0 = arith.constant 0 : i32
    %c0_i32_1 = arith.constant 0 : i32
    return %c0_i32, %c0_i32_0 : i32, i32
  }
  func.func @transform_5(%arg0: i32, %arg1: i32) -> (i32, i32) {
    %c0_i32 = arith.constant 0 : i32
    %c0_i32_0 = arith.constant 0 : i32
    return %arg0, %c0_i32 : i32, i32
  }
}

</mosaic_0001>

<bundles_post_ra>
// kernel: tpu_custom_call.1
= control target key start
LH: loop header
LB: loop body
LE: loop exit
PB: predicated region body
PF: predicated region fallthrough
CT: control target
= control target key end

     0   :  { %s1251_s0 = inlined_call_operand.hbm [shape: f32[16,128], index: 0, kind: input, shape index: {}]   ;;  %s1252_s1 = inlined_call_operand.hbm [shape: f32[128,128], index: 1, kind: input, shape index: {}]   ;;  %s1253_s2 = inlined_call_operand.vmem [shape: f32[1,128], index: 2, kind: input, shape index: {}]   ;;  %s1254_s3 = inlined_call_operand.hbm [shape: f32[128,128], index: 3, kind: input, shape index: {}]   ;;  %s1255_s4 = inlined_call_operand.vmem [shape: f32[1,128], index: 4, kind: input, shape index: {}]   ;;  %s1256_s5 = inlined_call_operand.hbm [shape: f32[16,128], index: 5, kind: output, shape index: {}]  }
   0x1   :  { %1260 = sst [smem:[#allocation12_spill]] %s1252_s1 }
   0x2   :  { %10 = vsyncpa [#allocation3], 0 }
   0x3   :  { %12 = vsyncpa [#allocation3 + $0x1], 0 }
   0x4   :  { %13 = vsyncpa [#allocation6], 0 }
   0x5   :  { %14 = vsyncpa [#allocation4], 0 }
   0x6   :  { %16 = vsyncpa [#allocation4 + $0x1], 0  ;;  %s1030_s18 = smov 0   ;;  %s1032_s19 = smov 0  }
   0x7   :  { %s1034_s20 = smov 0   ;;  %s1036_s21 = smov 0  }
   0x8   :  { %s1038_s22 = smov 0   ;;  %s1040_s23 = smov 0  }
   0x9 LB: > { %s616_s24 = sadd.s32 4294967295, %s990_s23   ;;  %s617_s25 = sadd.s32 4294967294, %s990_s23   ;;  %s990_s23 = sphi %s1040_s23, %s22_s23   ;;  %s986_s22 = sphi %s1038_s22, %s1278_s22   ;;  %s982_s21 = sphi %s1036_s21, %s1277_s21   ;;  %s978_s20 = sphi %s1034_s20, %s1276_s20   ;;  %s974_s19 = sphi %s1032_s19, %s1275_s19   ;;  %s970_s18 = sphi %s1030_s18, %s1274_s18  }
   0xa   : > { %p54_p0 = scmp.ne.s32.totalorder %s974_s19, %s970_s18  ;;  %p1064_p1 = scmp.eq.s32.totalorder %s616_s24, 0 }
   0xb   : > { %p1068_p2 = scmp.eq.s32.totalorder %s616_s24, 1  ;;  %p178_p3 = scmp.eq.s32.totalorder %s617_s25, 1 }
   0xc   : > { %s1261_s26 = scalar_select %p1064_p1, 1, 0 }
   0xd   : > { %p1074_p4 = por %p1064_p1, %p54_p0  ;;  %p618_p5 = scmp.ge.s32.totalorder %s990_s23, 1 }
   0xe   : > { %p1079_p6 = por %p178_p3, %p54_p0  ;;  %p185_p7 = scmp.lt.s32.totalorder %s990_s23, 3 }
   0xf   : > { %s1263_s28 = scalar_select %p1074_p4, 1, 0 }
  0x10   : > { %s1264_s29 = scalar_select %p1079_p6, 1, 0 }
  0x11   : > { %p1084_p8 = pnand %p618_p5, %p185_p7  ;;  %s992_s6 = smov [#allocation5]  }
  0x12   : > { %s199_s7 = sshll.u32 %s992_s6, 4  ;;  %s993_s9 = smov [#allocation7]   ;;  %s200_s7 = int_to_ptr.vmem [resolvable:$true] %s199_s7 }
  0x13   : > { %p751_p9 = pneg %p1084_p8  ;;  %s218_s10 = sshll.u32 %s993_s9, 4  ;;  %s219_s10 = int_to_ptr.vmem [resolvable:$true] %s218_s10 }
  0x14   : > { %s837_s11 = scalar_lea.vmem %s200_s7, 2048  ;;  %p845_p5 = scmp.lt.s32.totalorder %s200_s7, %s200_s7 }
  0x15   : > { %p1093_p11 = pnand %p751_p9, %p1064_p1  ;;  %p838_p13 = scmp.ne.s32.totalorder %s200_s7, %s837_s11 }
  0x16   : > { %p846_p7 = scmp.lt.s32.totalorder %s837_s11, %s837_s11 }
  0x17   : > { %p828_p12 = pneg %p1093_p11 }
  0x18   : > { %p847_p10 = por %p846_p7, %p845_p5 }
  0x19   : > { %p840_p0 = pnand %p838_p13, %p828_p12 }
  0x1b   : > { %p841_p3 = pneg %p840_p0 }
  0x1d   : > { %p848_p9 = pnand %p847_p10, %p841_p3 }
  0x1f   : > { %851 = shalt.err (!%p848_p9)
}
  0x20   : > { %s994_s12 = smov 128   ;;  %s995_s13 = smov 8  }
  0x21   : > { %s1267_s1 = sld [smem:[#allocation12_spill]]  ;;  %s863_s16 = scalar_lea.vmem %s219_s10, 2048 }
  0x22   : > { %p864_p6 = scmp.ne.s32.totalorder %s219_s10, %s863_s16  ;;  %p871_p1 = scmp.lt.s32.totalorder %s219_s10, %s219_s10 }
  0x23   : > { %p872_p4 = scmp.lt.s32.totalorder %s863_s16, %s863_s16 }
  0x24   : > { %p866_p13 = pnand %p864_p6, %p828_p12 }
  0x25   : > { %p873_p5 = por %p872_p4, %p871_p1 }
  0x26   : > { %p867_p0 = pneg %p866_p13 }
  0x27   : > { %754 = dma.hbm_to_vmem [thread:$0]  (!%p1093_p11), %s1267_s1, 2048, %s200_s7, [#allocation6], %s994_s12, %s994_s12, %s995_s13  }
  0x28   : > { %p874_p10 = pnand %p873_p5, %p867_p0 }
  0x2a   : > { %877 = shalt.err (!%p874_p10)
}
  0x2b   : > { %757 = dma.hbm_to_vmem [thread:$0]  (!%p1093_p11), %s1254_s3, 2048, %s219_s10, [#allocation6], %s994_s12, %s994_s12, %s995_s13  }
  0x2c   : > { %s34_s25 = sadd.s32 1, %s986_s22  ;;  %s41_s6 = sadd.s32 1, %s978_s20 }
  0x2d   : > { %p36_p1 = scmp.ge.s32.totalorder %s34_s25, 2  ;;  %p48_p4 = scmp.ne.s32.totalorder %s978_s20, %s974_s19 }
  0x2e   : > { %p49_p6 = scmp.eq.s32.totalorder %s990_s23, 0  ;;  %p768_p12 = scmp.lt.s32.totalorder %s990_s23, 2 }
  0x2f   : > { %s1280_s25 = smov (%p36_p1, %s34_s25), 0  ;;  %p1125_p7 = por %p1068_p2, %p48_p4 }
  0x30   : > { %p50_p3 = por %p49_p6, %p48_p4  ;;  %s38_s8 = ssub.s32 %s986_s22, %s1280_s25 }
  0x31   : > { %s235_s9 = sand.u32 1, %s978_s20   ;;  %p39_p9 = scmp.eq.s32.totalorder %s38_s8, 0 }
  0x32   : > { %s622_s10 = sshll.u32 %s235_s9, 3  ;;  %s623_s11 = sshll.u32 %s986_s22, 7 }
  0x33   : > { %s1134_s12 = scalar_select %p39_p9, %s978_s20, %s41_s6  }
  0x34   : > { %s244_s15 = scalar_lea.hbm %s1251_s0, %s623_s11  ;;  %s239_s16 = scalar_lea.vmem [#allocation2], %s622_s10 }
  0x35   : > { %s246_s17 = sshll.u32 %s239_s16, 4  ;;  %p1141_p11 = pnand %p768_p12, %p50_p3  ;;  %s247_s17 = int_to_ptr.vmem [resolvable:$true] %s246_s17 }
  0x36   : > { %s236_s24 = scalar_lea.sflag [#allocation3], %s235_s9  ;;  %s891_s8 = scalar_lea.vmem %s247_s17, 128 }
  0x37   : > { %p880_p2 = pneg %p1141_p11  ;;  %p892_p13 = scmp.ne.s32.totalorder %s247_s17, %s891_s8 }
  0x38   : > { %s996_s6 = smov [#allocation2]  }
  0x39   : > { %p894_p0 = pnand %p892_p13, %p880_p2  ;;  %s896_s1 = sshll.u32 %s996_s6, 4  ;;  %s897_s1 = int_to_ptr.vmem [resolvable:$false] %s896_s1 }
  0x3a   : > { %s898_s11 = scalar_lea.vmem %s897_s1, 256  ;;  %p899_p10 = scmp.lt.s32.totalorder %s247_s17, %s897_s1 }
  0x3b   : > { %p895_p5 = pneg %p894_p0  ;;  %p900_p1 = scmp.lt.s32.totalorder %s898_s11, %s891_s8 }
  0x3d   : > { %p901_p4 = por %p900_p1, %p899_p10 }
  0x3f   : > { %p902_p6 = pnand %p901_p4, %p895_p5 }
  0x41   : > { %905 = shalt.err (!%p902_p6)
}
  0x42   : > { %761 = dma.hbm_to_vmem [thread:$0]  (!%p1141_p11), %s244_s15, 128, %s247_s17, %s236_s24  }
  0x43   : > { %255 = sbr.rel (%p1084_p8) target bundleno = 515 (0x203), region = 40  ;;  %s1152_s9 = sand.u32 (!%p1084_p8), 1, %s974_s19  }
  0x44   : > { %s625_s10 = sshll.u32 (!%p1084_p8), %s1152_s9, 3  ;;  %s258_s13 = scalar_lea.sflag (!%p1084_p8), [#allocation3], %s1152_s9 }
  0x45   : > { %s1158_s1 = scalar_lea.vmem (!%p1084_p8), [#allocation2], %s625_s10  ;;  %p1270_p12 = scmp.ne.s32.totalorder (!%p1084_p8), %s1263_s28, 0 }
  0x48   : > { %957 = dma.done.wait (%p1270_p12), %s258_s13, 128  }
  0x49   : > { %959 = vsyncadd (%p1270_p12), %s258_s13, 4294967168  ;;  %p1271_p3 = scmp.ne.s32.totalorder %s1261_s26, 0 }
  0x4b   : > { %961 = dma.done.wait (%p1271_p3), [#allocation6], 4096  }
  0x4c   : > { %963 = vsyncadd (%p1271_p3), [#allocation6], 4294963200  ;;  %v997_v0 = vmov 0.0   ;;  %vm998_vm0 = vmmov 0   ;;  %v318_v1 = vld [vmem:[#allocation5 + $0x78] sm:$0xff]  ;;  %v317_v2 = vld [vmem:[#allocation5 + $0x70] sm:$0xff] }
  0x4d   : > { %669 = vmatprep.subr.mxu0 %v997_v0  ;;  %701 = vmatprep.mubr.msk.f32.mxu0 %vm998_vm0, %v997_v0  ;;  %v316_v3 = vld [vmem:[#allocation5 + $0x68] sm:$0xff]  ;;  %v315_v4 = vld [vmem:[#allocation5 + $0x60] sm:$0xff]  ;;  %v414_v5 = vld [vmem:[#allocation7 + $0x78] sm:$0xff]  ;;  %s632_s15 = sshll.u32 %s982_s21, 7  ;;  %s295_s16 = scalar_lea.vmem [#allocation8], %s625_s10 }
  0x4e   : > { %704 = vmatprep.subr.mxu1 %v997_v0  ;;  %736 = vmatprep.mubr.msk.f32.mxu1 %vm998_vm0, %v997_v0  ;;  %v314_v6 = vld [vmem:[#allocation5 + $0x58] sm:$0xff]  ;;  %v413_v7 = vld [vmem:[#allocation7 + $0x70] sm:$0xff]  ;;  %v412_v8 = vld [vmem:[#allocation7 + $0x68] sm:$0xff]  ;;  %s514_s17 = sshll.u32 %s295_s16, 4  ;;  %s512_s8 = scalar_lea.hbm %s1256_s5, %s632_s15  ;;  %s515_s17 = int_to_ptr.vmem [resolvable:$true] %s514_s17 }
  0x4f   : > { %670 = vmatpush3.msra.mxu0 %v318_v1  ;;  %705 = vmatpush3.msra.mxu1 %v414_v5  ;;  %v313_v9 = vld [vmem:[#allocation5 + $0x50] sm:$0xff]  ;;  %v411_v10 = vld [vmem:[#allocation7 + $0x60] sm:$0xff]  ;;  %v312_v11 = vld [vmem:[#allocation5 + $0x48] sm:$0xff]  ;;  %s501_s6 = scalar_lea.sflag [#allocation4], %s1152_s9  ;;  %s906_s11 = scalar_lea.vmem %s515_s17, 128 }
  0x50   : > { %671 = vmatprep.subr.mxu0 %v997_v0  ;;  %706 = vmatprep.subr.mxu1 %v997_v0  ;;  %v410_v12 = vld [vmem:[#allocation7 + $0x58] sm:$0xff]  ;;  %v311_v13 = vld [vmem:[#allocation5 + $0x40] sm:$0xff]  ;;  %v409_v14 = vld [vmem:[#allocation7 + $0x50] sm:$0xff]  ;;  %p907_p8 = scmp.ne.s32.totalorder %s515_s17, %s906_s11  ;;  %s999_s13 = smov [#allocation8]  }
  0x51   : > { %672 = vmatpush3.msra.mxu0 %v317_v2  ;;  %707 = vmatpush3.msra.mxu1 %v413_v7  ;;  %v310_v15 = vld [vmem:[#allocation5 + $0x38] sm:$0xff]  ;;  %v408_v16 = vld [vmem:[#allocation7 + $0x48] sm:$0xff]  ;;  %v309_v17 = vld [vmem:[#allocation5 + $0x30] sm:$0xff] }
  0x52   : > { %673 = vmatprep.subr.mxu0 %v997_v0  ;;  %708 = vmatprep.subr.mxu1 %v997_v0  ;;  %v407_v18 = vld [vmem:[#allocation7 + $0x40] sm:$0xff]  ;;  %v308_v19 = vld [vmem:[#allocation5 + $0x28] sm:$0xff]  ;;  %v406_v20 = vld [vmem:[#allocation7 + $0x38] sm:$0xff]  ;;  %p908_p9 = pnand %p907_p8, %p1125_p7 }
  0x53   : > { %674 = vmatpush3.msra.mxu0 %v316_v3  ;;  %709 = vmatpush3.msra.mxu1 %v412_v8  ;;  %v307_v21 = vld [vmem:[#allocation5 + $0x20] sm:$0xff]  ;;  %v405_v22 = vld [vmem:[#allocation7 + $0x30] sm:$0xff]  ;;  %v306_v23 = vld [vmem:[#allocation5 + $0x18] sm:$0xff] }
  0x54   : > { %675 = vmatprep.subr.mxu0 %v997_v0  ;;  %710 = vmatprep.subr.mxu1 %v997_v0  ;;  %v404_v24 = vld [vmem:[#allocation7 + $0x28] sm:$0xff]  ;;  %v305_v25 = vld [vmem:[#allocation5 + $0x10] sm:$0xff]  ;;  %v403_v26 = vld [vmem:[#allocation7 + $0x20] sm:$0xff]  ;;  %p909_p11 = pneg %p908_p9 }
  0x55   : > { %676 = vmatpush3.msra.mxu0 %v315_v4  ;;  %711 = vmatpush3.msra.mxu1 %v411_v10  ;;  %v304_v27 = vld [vmem:[#allocation5 + $0x8] sm:$0xff]  ;;  %v402_v28 = vld [vmem:[#allocation7 + $0x18] sm:$0xff]  ;;  %v303_v29 = vld [vmem:[#allocation5] sm:$0xff] }
  0x56   : > { %677 = vmatprep.subr.mxu0 %v997_v0  ;;  %712 = vmatprep.subr.mxu1 %v997_v0  ;;  %v302_v30 = vld [vmem:[%s1158_s1] sm:$0xff]  ;;  %v400_v32 = vld [vmem:[#allocation7 + $0x8] sm:$0xff]  ;;  %v399_v33 = vld [vmem:[#allocation7] sm:$0xff]  ;;  %s910_s1 = sshll.u32 %s999_s13, 4  ;;  %s911_s1 = int_to_ptr.vmem [resolvable:$false] %s910_s1 }
  0x57   : > { %678 = vmatpush3.msra.mxu0 %v314_v6  ;;  %713 = vmatpush3.msra.mxu1 %v410_v12  ;;  %v401_v31 = vld [vmem:[#allocation7 + $0x10] sm:$0xff]  ;;  %s912_s21 = scalar_lea.vmem %s911_s1, 256  ;;  %p913_p2 = scmp.lt.s32.totalorder %s515_s17, %s911_s1 }
  0x58   : > { %679 = vmatprep.subr.mxu0 %v997_v0  ;;  %714 = vmatprep.subr.mxu1 %v997_v0  ;;  %v629_v34 = vld [vmem:[%s1253_s2] ss:$0 sm:$0xff]  ;;  %p914_p13 = scmp.lt.s32.totalorder %s912_s21, %s906_s11 }
  0x59   : > { %680 = vmatpush3.msra.mxu0 %v313_v9  ;;  %715 = vmatpush3.msra.mxu1 %v409_v14  ;;  %v630_v40 = vld [vmem:[%s1255_s4] ss:$0 sm:$0xff] }
  0x5a   : > { %681 = vmatprep.subr.mxu0 %v997_v0  ;;  %716 = vmatprep.subr.mxu1 %v997_v0  ;;  %p915_p0 = por %p914_p13, %p913_p2 }
  0x5b   : > { %682 = vmatpush3.msra.mxu0 %v312_v11  ;;  %717 = vmatpush3.msra.mxu1 %v408_v16 }
  0x5c   : > { %683 = vmatprep.subr.mxu0 %v997_v0  ;;  %718 = vmatprep.subr.mxu1 %v997_v0  ;;  %p916_p5 = pnand %p915_p0, %p909_p11 }
  0x5d   : > { %684 = vmatpush3.msra.mxu0 %v311_v13  ;;  %719 = vmatpush3.msra.mxu1 %v407_v18 }
  0x5e   : > { %685 = vmatprep.subr.mxu0 %v997_v0  ;;  %720 = vmatprep.subr.mxu1 %v997_v0 }
  0x5f   : > { %686 = vmatpush3.msra.mxu0 %v310_v15  ;;  %721 = vmatpush3.msra.mxu1 %v406_v20 }
  0x60   : > { %687 = vmatprep.subr.mxu0 %v997_v0  ;;  %722 = vmatprep.subr.mxu1 %v997_v0 }
  0x61   : > { %688 = vmatpush3.msra.mxu0 %v309_v17  ;;  %723 = vmatpush3.msra.mxu1 %v405_v22 }
  0x62   : > { %689 = vmatprep.subr.mxu0 %v997_v0  ;;  %724 = vmatprep.subr.mxu1 %v997_v0 }
  0x63   : > { %690 = vmatpush3.msra.mxu0 %v308_v19  ;;  %725 = vmatpush3.msra.mxu1 %v404_v24 }
  0x64   : > { %691 = vmatprep.subr.mxu0 %v997_v0  ;;  %726 = vmatprep.subr.mxu1 %v997_v0 }
  0x65   : > { %692 = vmatpush3.msra.mxu0 %v307_v21  ;;  %727 = vmatpush3.msra.mxu1 %v403_v26 }
  0x66   : > { %693 = vmatprep.subr.mxu0 %v997_v0  ;;  %728 = vmatprep.subr.mxu1 %v997_v0 }
  0x67   : > { %694 = vmatpush3.msra.mxu0 %v306_v23  ;;  %729 = vmatpush3.msra.mxu1 %v402_v28 }
  0x68   : > { %695 = vmatprep.subr.mxu0 %v997_v0  ;;  %730 = vmatprep.subr.mxu1 %v997_v0 }
  0x69   : > { %696 = vmatpush3.msra.mxu0 %v305_v25  ;;  %731 = vmatpush3.msra.mxu1 %v401_v31 }
  0x6a   : > { %697 = vmatprep.subr.mxu0 %v997_v0  ;;  %732 = vmatprep.subr.mxu1 %v997_v0 }
  0x6b   : > { %698 = vmatpush3.msra.mxu0 %v304_v27  ;;  %733 = vmatpush3.msra.mxu1 %v400_v32 }
  0x6c   : > { %699 = vmatprep.subr.mxu0 %v997_v0  ;;  %734 = vmatprep.subr.mxu1 %v997_v0 }
  0x6d   : > { %700 = vmatpush3.msra.mxu0 %v303_v29  ;;  %735 = vmatpush3.msra.mxu1 %v399_v33 }
  0x6e   : > { %702 = vmatmul.mubr.f32.vlgmr.msra.gmra.mxu0 %v302_v30 }
 0x12e   : > { %v393_v35 = vpop.f32.mrf.mxu0 }
 0x12f   : > { %v394_v36 = vadd.f32 %v629_v34, %v393_v35 }
 0x130   : > { %v703_v37 = vpop.f32.mrf.mxu0 }
 0x131   : > { %v397_v38 = vmax.f32 %v394_v36, 0.0 }
 0x133   : > { %737 = vmatmul.mubr.f32.vlgmr.msra.gmra.mxu1 %v397_v38 }
 0x1f3   : > { %v481_v39 = vpop.f32.mrf.mxu1 }
 0x1f4   : > { %v498_v42 = vadd.f32 %v630_v40, %v481_v39 }
 0x1f5   : > { %v738_v41 = vpop.f32.mrf.mxu1 }
 0x1f6   : > { %499 = vst [vmem:[%s295_s16] sm:$0xff] %v498_v42 }
 0x1f7   : > { %919 = shalt.err (!%p916_p5)
}
 0x1f8   : > { %s920_s10 = scalar_lea.hbm %s512_s8, 128  ;;  %s924_s28 = scalar_lea.hbm %s1256_s5, 256 }
 0x1f9   : > { %p921_p10 = scmp.ne.s32.totalorder %s512_s8, %s920_s10  ;;  %p925_p6 = scmp.lt.s32.totalorder %s512_s8, %s1256_s5 }
 0x1fa   : > { %p926_p12 = scmp.lt.s32.totalorder %s924_s28, %s920_s10 }
 0x1fb   : > { %p922_p1 = pnand %p921_p10, %p1125_p7 }
 0x1fc   : > { %p927_p3 = por %p926_p12, %p925_p6 }
 0x1fd   : > { %p923_p4 = pneg %p922_p1 }
 0x1ff   : > { %p928_p8 = pnand %p927_p3, %p923_p4 }
 0x201   : > { %931 = shalt.err (!%p928_p8)
}
 0x202   : > { %749 = dma.vmem_to_hbm [thread:$0]  (%p1125_p7), %s515_s17, 128, %s512_s8, %s501_s6  }
 0x203 PF: > { %s526_s15 = sand.u32 1, %s970_s18   ;;  %p1272_p9 = scmp.ne.s32.totalorder %s1264_s29, 0 }
 0x204   : > { %p1273_p11 = scmp.ge.s32.totalorder %s990_s23, 2  ;;  %s527_s16 = scalar_lea.sflag [#allocation4], %s526_s15 }
 0x206   : > { %p763_p2 = pnand %p1273_p11, %p1272_p9 }
 0x208   : > { %p764_p13 = pneg %p763_p2 }
 0x20a   : > { %965 = dma.done.wait (%p764_p13), %s527_s16, 128  }
 0x20b   : > { %967 = vsyncadd (%p764_p13), %s527_s16, 4294967168  ;;  %s22_s23 = sadd.s32 1, %s990_s23   ;;  %s1274_s18 = smov %s974_s19 }
 0x20c   : > { %p19_p0 = scmp.ge.s32.totalorder %s22_s23, 4   ;;  %s1275_s19 = smov %s978_s20 }
 0x20d   : > { %s1276_s20 = smov %s1134_s12  ;;  %s1277_s21 = smov %s986_s22 }
 0x20e   : > { %s1278_s22 = smov %s1280_s25  ;;  %21 = sbr.rel (!%p19_p0) target bundleno = 9 (0x9), region = 104 }
 0x213   :  { %532 = vsyncpa [#allocation3], 1 }
 0x214   :  { %534 = vsyncpa [#allocation3 + $0x1], 1 }
 0x215   :  { %535 = vsyncpa [#allocation6], 1 }
 0x216   :  { %536 = vsyncpa [#allocation4], 1 }
 0x217   :  { %538 = vsyncpa [#allocation4 + $0x1], 1 }

</bundles_post_ra>
